<compile_context>
chip_gen: v5e
topology: v5e:2x2
jax: 0.10.0
libtpu: 0.0.40
codegen_flags: <defaults>
</compile_context>

<pallas_src>
import math

import jax
import jax.numpy as jnp
from jax.experimental import pallas as pl
from jax.experimental.pallas import tpu as pltpu

_LANE = 128
_TARGET_BLOCK_BYTES = 1 << 20  # ~1 MiB per streamed operand block.


def _sublane(dtype):
    # Minimum sublane granularity by element width (f32: 8, bf16: 16, int8: 32).
    return {4: 8, 2: 16, 1: 32}.get(jnp.dtype(dtype).itemsize, 8)


def _round_down(x, m):
    return (x // m) * m


def _mul_kernel(a_ref, b_ref, o_ref):
    # Elementwise multiply on the VPU. b's block may be (blk_r, blk_c),
    # (blk_r, 1) or (1, blk_c); broadcasting happens in-register.
    o_ref[...] = a_ref[...] * b_ref[...]


def _mul2d(a2, b2, out_dtype):
    """out = a2 * b2 where a2 is (R, C) and b2 is (R, C), (R, 1) or (1, C)."""
    R, C = a2.shape
    itemsize = jnp.dtype(out_dtype).itemsize
    sub = _sublane(out_dtype)

    # Lane-dense blocks of about _TARGET_BLOCK_BYTES per streamed operand.
    if C * sub * itemsize <= _TARGET_BLOCK_BYTES:
        blk_c = C  # full width (block dim == array dim is always legal)
    else:
        blk_c = max(_LANE, _round_down(_TARGET_BLOCK_BYTES // (sub * itemsize), _LANE))
    blk_r = max(sub, _round_down(_TARGET_BLOCK_BYTES // (blk_c * itemsize), sub))
    if R <= blk_r:
        blk_r = R  # single row-block, exactly the array height (no masking)

    grid = (pl.cdiv(R, blk_r), pl.cdiv(C, blk_c))

    a_spec = pl.BlockSpec((blk_r, blk_c), lambda i, j: (i, j))
    if b2.shape == (R, C):
        b_spec = pl.BlockSpec((blk_r, blk_c), lambda i, j: (i, j))
    elif b2.shape == (R, 1):
        b_spec = pl.BlockSpec((blk_r, 1), lambda i, j: (i, 0))
    elif b2.shape == (1, C):
        b_spec = pl.BlockSpec((1, blk_c), lambda i, j: (0, j))
    else:
        raise ValueError(f"unsupported operand shape {b2.shape} for slab {(R, C)}")
    o_spec = pl.BlockSpec((blk_r, blk_c), lambda i, j: (i, j))

    return pl.pallas_call(
        _mul_kernel,
        out_shape=jax.ShapeDtypeStruct((R, C), out_dtype),
        grid_spec=pltpu.PrefetchScalarGridSpec(
            num_scalar_prefetch=0,
            grid=grid,
            in_specs=[a_spec, b_spec],
            out_specs=o_spec,
        ),
        compiler_params=pltpu.CompilerParams(
            dimension_semantics=("parallel", "parallel"),
        ),
    )(a2, b2)


def _widest_cols(n):
    for c in (1024, 512, 384, 256, 128):
        if n % c == 0:
            return c
    return None


def _mul_flat(a_flat, b_flat, out_dtype):
    """Same-shape elementwise multiply of two flat arrays (length n)."""
    n = a_flat.shape[0]
    if n < _LANE:
        return a_flat * b_flat  # tiny: launch overhead dominates, keep it in XLA
    cols = _widest_cols(n)
    if cols is None:
        # Irregular count: Pallas on the 128-aligned prefix, jnp on the (<128)
        # tail — avoids rewriting both inputs with a pad/scatter pass.
        n_main = _round_down(n, _LANE)
        main = _mul_flat(a_flat[:n_main], b_flat[:n_main], out_dtype)
        return jnp.concatenate([main, a_flat[n_main:] * b_flat[n_main:]])
    rows = n // cols
    out2 = _mul2d(a_flat.reshape(rows, cols), b_flat.reshape(rows, cols), out_dtype)
    return out2.reshape(n)


def _mul_dense_small(dense, small, out_shape, out_dtype):
    """dense has the full output shape; small broadcasts against it.

    Returns the product without materializing the full-size broadcast of
    `small`, or None if the pattern has no cheap 2-D factorization.
    """
    rank = len(out_shape)
    n = math.prod(out_shape)
    s_shape = (1,) * (rank - small.ndim) + tuple(small.shape)
    small = small.reshape(s_shape)
    nz = [i for i, d in enumerate(s_shape) if d != 1]

    if not nz:
        # Scalar operand: reuse the same-shape tiling; the scale becomes a tiny
        # (rows, 1) column that the kernel lane-broadcasts.
        cols = _widest_cols(n)
        if cols is None:
            return None
        rows = n // cols
        scale = jnp.broadcast_to(small.reshape(1, 1), (rows, 1))
        return _mul2d(dense.reshape(rows, cols), scale, out_dtype).reshape(out_shape)

    # Row split: everything after small's last non-1 dim is broadcast
    # (e.g. per-channel (1,C,1,1) vs NCHW -> rows=N*C, cols=H*W, scale (N*C,1)).
    k_row = nz[-1] + 1
    rows_r = math.prod(out_shape[:k_row])
    cols_r = n // rows_r
    # Column split: everything before small's first non-1 dim is broadcast
    # (e.g. spatial mask (H,W) vs NCHW -> rows=N*C, cols=H*W, scale (1,H*W)).
    k_col = nz[0]
    rows_c = math.prod(out_shape[:k_col])
    cols_c = n // rows_c

    row_ok = cols_r >= _LANE                        # lane-dense slab, tiny (rows,1) scale
    col_ok = cols_c >= _LANE and cols_c <= n // 2   # (1,cols) scale is still a real saving
    if row_ok and (not col_ok or rows_r <= cols_c):
        scale = jnp.broadcast_to(small, out_shape[:k_row] + (1,) * (rank - k_row))
        scale = scale.reshape(rows_r, 1)
        return _mul2d(dense.reshape(rows_r, cols_r), scale, out_dtype).reshape(out_shape)
    if col_ok:
        scale = jnp.broadcast_to(small, (1,) * k_col + out_shape[k_col:])
        scale = scale.reshape(1, cols_c)
        return _mul2d(dense.reshape(rows_c, cols_c), scale, out_dtype).reshape(out_shape)
    return None


def qmul(x_left, x_right):
    """QMul.forward: elementwise multiply with broadcasting (Pallas TPU)."""
    x_left = jnp.asarray(x_left)
    x_right = jnp.asarray(x_right)
    out_shape = tuple(jnp.broadcast_shapes(x_left.shape, x_right.shape))
    out_dtype = jnp.promote_types(x_left.dtype, x_right.dtype)
    a = x_left.astype(out_dtype)   # no-op when dtypes already match
    b = x_right.astype(out_dtype)

    n = math.prod(out_shape)
    if n == 0:
        return jnp.zeros(out_shape, out_dtype)

    # 1) Same shape: stream both operands directly (no broadcast, no padding).
    if a.shape == b.shape:
        return _mul_flat(a.reshape(n), b.reshape(n), out_dtype).reshape(out_shape)

    # 2) One operand dense, the other broadcasts: keep the small operand small
    #    and broadcast it inside the kernel.
    if a.shape == out_shape or b.shape == out_shape:
        dense, small = (a, b) if a.shape == out_shape else (b, a)
        out = _mul_dense_small(dense, small, out_shape, out_dtype)
        if out is not None:
            return out

    # 3) General fallback for mixed broadcast patterns.
    # TODO(synk): patterns like (N,1,H,1)*(1,C,1,W) still materialize both sides.
    af = jnp.broadcast_to(a, out_shape).reshape(n)
    bf = jnp.broadcast_to(b, out_shape).reshape(n)
    return _mul_flat(af, bf, out_dtype).reshape(out_shape)


if __name__ == "__main__":
    key = jax.random.PRNGKey(0)
    k1, k2, k3, k4 = jax.random.split(key, 4)

    # NCHW activation times a per-channel scale (common torch.mul pattern).
    x_left = jax.random.normal(k1, (2, 4, 16, 16), dtype=jnp.float32)
    x_right = jax.random.normal(k2, (1, 4, 1, 1), dtype=jnp.float32)
    out = qmul(x_left, x_right)
    jax.block_until_ready(out)
    ref = x_left * x_right
    assert out.shape == ref.shape and out.dtype == ref.dtype
    assert jnp.allclose(out, ref, atol=1e-6, rtol=1e-6)

    # Same-shape (no broadcast) path.
    y = qmul(x_left, x_left)
    jax.block_until_ready(y)
    assert jnp.allclose(y, x_left * x_left, atol=1e-6, rtol=1e-6)

    # Scalar broadcast path.
    s = jnp.float32(0.5)
    z = qmul(x_left, s)
    jax.block_until_ready(z)
    assert jnp.allclose(z, x_left * 0.5, atol=1e-6, rtol=1e-6)

    # Spatial-mask (column-broadcast) path.
    mask = jax.random.normal(k3, (1, 1, 16, 16), dtype=jnp.float32)
    m = qmul(x_left, mask)
    jax.block_until_ready(m)
    assert jnp.allclose(m, x_left * mask, atol=1e-6, rtol=1e-6)

    # Larger per-channel case that exercises a multi-step grid (2 row blocks).
    big = jax.random.normal(k4, (16, 32, 32, 32), dtype=jnp.float32)
    scale = jax.random.normal(k2, (1, 32, 1, 1), dtype=jnp.float32)
    g = qmul(big, scale)
    jax.block_until_ready(g)
    assert jnp.allclose(g, big * scale, atol=1e-6, rtol=1e-6)

    print("KERNEL_OK")
</pallas_src>

<mosaic_0001>
module attributes {stable_mosaic.version = 11 : i64} {
  func.func @_mul_kernel(%arg0: i32, %arg1: i32, %arg2: memref<8x256xf32, #tpu.memory_space<vmem>>, %arg3: memref<8x1xf32, #tpu.memory_space<vmem>>, %arg4: memref<8x256xf32, #tpu.memory_space<vmem>>) attributes {dimension_semantics = [#tpu.dimension_semantics<parallel>, #tpu.dimension_semantics<parallel>], iteration_bounds = array<i64: 1, 1>, scalar_prefetch = 0 : i64, scratch_operands = 0 : i64, tpu.core_type = #tpu.core_type<tc>, window_params = [{transform_indices = @transform_0, window_bounds = array<i64: 8, 256>}, {transform_indices = @transform_1, window_bounds = array<i64: 8, 1>}, {transform_indices = @transform_2, window_bounds = array<i64: 8, 256>}]} {
    %c0 = arith.constant 0 : index
    %c0_0 = arith.constant 0 : index
    %0 = vector.load %arg2[%c0, %c0_0] : memref<8x256xf32, #tpu.memory_space<vmem>>, vector<8x256xf32>
    %c0_1 = arith.constant 0 : index
    %c0_2 = arith.constant 0 : index
    %1 = vector.load %arg3[%c0_1, %c0_2] : memref<8x1xf32, #tpu.memory_space<vmem>>, vector<8x1xf32>
    %2 = vector.broadcast %1 : vector<8x1xf32> to vector<8x256xf32>
    %3 = arith.mulf %0, %2 : vector<8x256xf32>
    %c0_3 = arith.constant 0 : index
    %c0_4 = arith.constant 0 : index
    %4 = vector.load %arg4[%c0_3, %c0_4] : memref<8x256xf32, #tpu.memory_space<vmem>>, vector<8x256xf32>
    tpu.vector_store %arg4[%c0_3, %c0_4], %3 {strides = array<i32>} : memref<8x256xf32, #tpu.memory_space<vmem>>, vector<8x256xf32>,
    return
  }
  func.func @transform_0(%arg0: i32, %arg1: i32) -> (i32, i32) {
    %c0_i32 = arith.constant 0 : i32
    return %arg0, %arg1 : i32, i32
  }
  func.func @transform_1(%arg0: i32, %arg1: i32) -> (i32, i32) {
    %c0_i32 = arith.constant 0 : i32
    %c0_i32_0 = arith.constant 0 : i32
    return %arg0, %c0_i32 : i32, i32
  }
  func.func @transform_2(%arg0: i32, %arg1: i32) -> (i32, i32) {
    %c0_i32 = arith.constant 0 : i32
    return %arg0, %arg1 : i32, i32
  }
}

</mosaic_0001>

<bundles_post_ra>
// kernel: tpu_custom_call.1
= control target key start
LH: loop header
LB: loop body
LE: loop exit
PB: predicated region body
PF: predicated region fallthrough
CT: control target
= control target key end

     0   :  { %7 = vsyncpa [#allocation3], 0  ;;  %s138_s0 = inlined_call_operand.hbm [shape: f32[8,256], index: 0, kind: input, shape index: {}]   ;;  %s139_s1 = inlined_call_operand.vmem [shape: f32[8,1], index: 1, kind: input, shape index: {}]   ;;  %s140_s2 = inlined_call_operand.hbm [shape: f32[8,256], index: 2, kind: output, shape index: {}]  }
   0x1   :  { %8 = vsyncpa [#allocation4], 0  ;;  %s14_s11 = sshll.u32 %s138_s0, 4  ;;  %s111_s12 = smov [#allocation2]   ;;  %s15_s11 = int_to_ptr.hbm [resolvable:$true] %s14_s11 }
   0x2   :  { %s16_s13 = sshll.u32 %s111_s12, 4  ;;  %s17_s13 = int_to_ptr.vmem [resolvable:$true] %s16_s13 }
   0x3   :  { %19 = dma.hbm_to_vmem [thread:$0]  %s15_s11, 256, %s17_s13, [#allocation3]  }
   0x4   :  { %107 = dma.done.wait [#allocation3], 256  }
   0x5   :  { %108 = vsyncadd [#allocation3], 4294967040  ;;  %v112_v0 = vmov 0   ;;  %v28_v1 = vld [vmem:[%s139_s1] sm:$0xff]  ;;  %v27_v3 = vld [vmem:[#allocation2 + $0x8] sm:$0xff]  ;;  %s113_s16 = smov [#allocation5]  }
   0x6   :  { %58 = vset.pattern.permute.xlu0 %v112_v0  ;;  %v26_v2 = vld [vmem:[#allocation2] sm:$0xff]  ;;  %s43_s17 = sshll.u32 %s113_s16, 4  ;;  %s45_s19 = sshll.u32 %s140_s2, 4  ;;  %s44_s17 = int_to_ptr.vmem [resolvable:$true] %s43_s17  ;;  %s46_s19 = int_to_ptr.hbm [resolvable:$true] %s45_s19 }
   0x7   :  { %31 = vperm.xlu0 %58, %v28_v1  }
  0x79   :  { %v32_v4 = vpop.permute.xlu0 %31 }
  0x7a   :  { %v34_v5 = vmul.f32 %v32_v4, %v26_v2  ;;  %v35_v6 = vmul.f32 %v32_v4, %v27_v3 }
  0x7c   :  { %36 = vst [vmem:[#allocation5] sm:$0xff] %v34_v5 }
  0x7d   :  { %37 = vst [vmem:[#allocation5 + $0x8] sm:$0xff] %v35_v6 }
  0x7e   :  { %48 = dma.vmem_to_hbm [thread:$0]  %s44_s17, 256, %s46_s19, [#allocation4]  }
  0x7f   :  { %109 = dma.done.wait [#allocation4], 256  }
  0x80   :  { %110 = vsyncadd [#allocation4], 4294967040 }
  0x81   :  { %53 = vsyncpa [#allocation3], 1 }
  0x82   :  { %54 = vsyncpa [#allocation4], 1 }

</bundles_post_ra>
